<compile_context>
chip_gen: v6e
topology: v6e:2x2x1
jax: 0.10.0
libtpu: 0.0.40
codegen_flags: <defaults>
</compile_context>

<pallas_src>
import jax
import jax.numpy as jnp
from jax.experimental import pallas as pl
from jax.experimental.pallas import tpu as pltpu


def _round_up(v: int, m: int) -> int:
    return ((v + m - 1) // m) * m


def _bbox_kernel(x_ref, o_ref):
    # x_ref / o_ref: (4, TILE_N) tiles in VMEM; lane dimension = TILE_N (dense).
    # Input rows:  [x0; y0; x1; y1]      Output rows: [cx; cy; w; h]
    x = x_ref[...]
    lo = x[0:2, :]                      # [x0; y0]
    hi = x[2:4, :]                      # [x1; y1]
    o_ref[0:2, :] = (lo + hi) * 0.5     # [cx; cy]
    o_ref[2:4, :] = hi - lo             # [w ; h ]


def box_xyxy_to_cxcywh(x, *, max_tile_n: int = 65536):
    """(N, 4) boxes in [x0, y0, x1, y1] -> (N, 4) boxes in [cx, cy, w, h]."""
    n, c = x.shape
    if c != 4:
        raise ValueError("expected boxes with 4 coordinates on the last axis")

    # Wrapper-side layout plumbing (fused by XLA around the kernel): transpose
    # to a lane-dense (4, N_pad) slab, N_pad a multiple of 128.  Padded lanes
    # are computed harmlessly and sliced off afterwards.
    xt = jnp.transpose(x)                           # (4, N)
    n_pad = _round_up(max(n, 1), 128)
    if n_pad != n:
        xt = jnp.pad(xt, ((0, 0), (0, n_pad - n)))

    tile_n = min(max_tile_n, n_pad)                 # multiple of 128 by construction
    grid = (pl.cdiv(n_pad, tile_n),)

    out = pl.pallas_call(
        _bbox_kernel,
        out_shape=jax.ShapeDtypeStruct((4, n_pad), x.dtype),
        grid=grid,
        in_specs=[pl.BlockSpec((4, tile_n), lambda i: (0, i))],
        out_specs=pl.BlockSpec((4, tile_n), lambda i: (0, i)),
        compiler_params=pltpu.CompilerParams(
            dimension_semantics=("parallel",),
        ),
    )(xt)

    # Drop lane padding and return to the (N, 4) convention.
    return jnp.transpose(out[:, :n])


class Bbox:
    """JAX/Pallas equivalent of the PyTorch Bbox module (no parameters)."""

    def __init__(self):
        self._fn = jax.jit(box_xyxy_to_cxcywh)

    def __call__(self, x):
        return self._fn(x)


if __name__ == "__main__":
    key = jax.random.PRNGKey(0)
    # Matches gen_np_args(50, 4): 50 boxes with 4 coordinates each.
    x = jax.random.uniform(key, (50, 4), dtype=jnp.float32) * 100.0

    model = Bbox()
    out = jax.block_until_ready(model(x))

    # Pure-JAX reference (same formula as the PyTorch module).
    x0, y0, x1, y1 = x[:, 0], x[:, 1], x[:, 2], x[:, 3]
    ref = jnp.stack([(x0 + x1) / 2, (y0 + y1) / 2, x1 - x0, y1 - y0], axis=-1)
    assert out.shape == (50, 4)
    assert out.dtype == x.dtype
    assert jnp.allclose(out, ref, atol=1e-6, rtol=1e-6), "mismatch vs reference"
    print("KERNEL_OK")
</pallas_src>

<mosaic_0001>
module attributes {stable_mosaic.version = 11 : i64} {
  func.func @_bbox_kernel(%arg0: i32, %arg1: memref<4x128xf32, #tpu.memory_space<vmem>>, %arg2: memref<4x128xf32, #tpu.memory_space<vmem>>) attributes {dimension_semantics = [#tpu.dimension_semantics<parallel>], iteration_bounds = array<i64: 1>, scalar_prefetch = 0 : i64, scratch_operands = 0 : i64, tpu.core_type = #tpu.core_type<tc>, window_params = [{transform_indices = @transform_0, window_bounds = array<i64: 4, 128>}, {transform_indices = @transform_1, window_bounds = array<i64: 4, 128>}]} {
    %c0 = arith.constant 0 : index
    %c0_0 = arith.constant 0 : index
    %0 = vector.load %arg1[%c0, %c0_0] : memref<4x128xf32, #tpu.memory_space<vmem>>, vector<4x128xf32>
    %1 = vector.extract_strided_slice %0 {offsets = [0, 0], sizes = [2, 128], strides = [1, 1]} : vector<4x128xf32> to vector<2x128xf32>
    %2 = vector.extract_strided_slice %0 {offsets = [2, 0], sizes = [2, 128], strides = [1, 1]} : vector<4x128xf32> to vector<2x128xf32>
    %3 = arith.addf %1, %2 : vector<2x128xf32>
    %cst = arith.constant 5.000000e-01 : f32
    %4 = vector.broadcast %cst : f32 to vector<2x128xf32>
    %5 = arith.mulf %3, %4 : vector<2x128xf32>
    %c0_1 = arith.constant 0 : index
    %c0_2 = arith.constant 0 : index
    %6 = vector.load %arg2[%c0_1, %c0_2] : memref<4x128xf32, #tpu.memory_space<vmem>>, vector<2x128xf32>
    tpu.vector_store %arg2[%c0_1, %c0_2], %5 {strides = array<i32>} : memref<4x128xf32, #tpu.memory_space<vmem>>, vector<2x128xf32>,
    %7 = arith.subf %2, %1 : vector<2x128xf32>
    %c2 = arith.constant 2 : index
    %c0_3 = arith.constant 0 : index
    %8 = vector.load %arg2[%c2, %c0_3] : memref<4x128xf32, #tpu.memory_space<vmem>>, vector<2x128xf32>
    tpu.vector_store %arg2[%c2, %c0_3], %7 {strides = array<i32>} : memref<4x128xf32, #tpu.memory_space<vmem>>, vector<2x128xf32>,
    return
  }
  func.func @transform_0(%arg0: i32) -> (i32, i32) {
    %c0_i32 = arith.constant 0 : i32
    %c0_i32_0 = arith.constant 0 : i32
    return %c0_i32, %arg0 : i32, i32
  }
  func.func @transform_1(%arg0: i32) -> (i32, i32) {
    %c0_i32 = arith.constant 0 : i32
    %c0_i32_0 = arith.constant 0 : i32
    return %c0_i32, %arg0 : i32, i32
  }
}

</mosaic_0001>

<bundles_post_ra>
// kernel: box_xyxy_to_cxcywh.1
= control target key start
LH: loop header
LB: loop body
LE: loop exit
PB: predicated region body
PF: predicated region fallthrough
CT: control target
= control target key end

     0   :  { %s42_s0 = inlined_call_operand.vmem [shape: f32[4,128], index: 0, kind: input, shape index: {}]   ;;  %s43_s1 = inlined_call_operand.vmem [shape: f32[4,128], index: 1, kind: output, shape index: {}]  }
   0x1   :  { %v8_v0 = vld [vmem:[%s42_s0] sm:$0xf] }
   0x2   :  { %v10_v1 = vrot.slane %v8_v0, 2  ;;  %v15_v2 = vrot.slane %v8_v0, 6 }
   0x4   :  { %v12_v3 = vadd.f32 %v10_v1, %v8_v0  ;;  %v17_v4 = vsub.f32 %v8_v0, %v15_v2 }
   0x6   :  { %v13_v5 = vmul.f32 0.5, %v12_v3  ;;  %18 = vst [vmem:[%s43_s1] sm:$0xc] %v17_v4 }
   0x8   :  { %14 = vst [vmem:[%s43_s1] sm:$0x3] %v13_v5 }

</bundles_post_ra>
